<compile_context>
chip_gen: v6e
topology: v6e:2x2x1
jax: 0.10.0
libtpu: 0.0.40
codegen_flags: <defaults>
</compile_context>

<pallas_src>
import functools

import jax
import jax.numpy as jnp
from jax import lax
from jax.experimental import pallas as pl
from jax.experimental.pallas import tpu as pltpu


def _mlp_l_kernel(x_ref, w_ref, b_ref, o_ref):
    x = x_ref[...]          # (tile_b, n_mlp), native dtype
    w = w_ref[...]          # (out_dim, n_mlp), same dtype as x (PyTorch layout)
    b = b_ref[...]          # (out_dim, 1), f32

    # (out_dim, tile_b) = w @ x^T : transposed-RHS matmul on the MXU, f32 acc.
    # Lane-dense: the large batch axis sits on the 128-wide lane dimension.
    logits = lax.dot_general(
        w, x,
        dimension_numbers=(((1,), (1,)), ((), ())),
        preferred_element_type=jnp.float32,
    ) + b

    # LeakyReLU (PyTorch default negative_slope = 0.01).
    act = jnp.maximum(logits, 0.01 * logits)

    # Numerically-stable softmax over the out_dim (sublane) axis, which is
    # dim=1 of the original (B, 5) activations.  Exact divide (not approx).
    m = jnp.max(act, axis=0, keepdims=True)
    e = jnp.exp(act - m)
    denom = jnp.sum(e, axis=0, keepdims=True)
    o_ref[...] = (e / denom).astype(o_ref.dtype)


def _round_up(v, m):
    return ((v + m - 1) // m) * m


def _pick_tiling(batch, n_mlp, out_dim, itemsize, rows_cap=None):
    """Pick (tile_b, b_pad, vmem_limit_bytes) from shapes and the chip's VMEM."""
    try:
        vmem_cap = int(pltpu.get_tpu_info().vmem_capacity_bytes)
    except Exception:  # conservative fallback: v7x per-TC VMEM
        vmem_cap = 64 << 20
    # Headroom under physical VMEM: ~56 MiB on 64 MiB parts, 112 MiB on 128 MiB.
    vmem_limit = max(32 << 20, min((vmem_cap * 7) // 8, 112 << 20))

    # Per-batch-row VMEM cost (lane-padded layouts): double-buffered x tile,
    # double-buffered (out_dim, tile_b) output, ~4 f32 softmax temporaries.
    out_sub = _round_up(out_dim, 8)
    per_row = (2 * _round_up(n_mlp, 128) * itemsize   # x double buffer
               + 2 * out_sub * itemsize               # out double buffer
               + 4 * out_sub * 4)                     # f32 temporaries
    vmem_rows = int(vmem_limit * 0.7) // per_row

    # Target ~4 MiB of x HBM bytes per grid step (per-step overhead ~0.35us).
    hbm_rows = (4 << 20) // max(1, n_mlp * itemsize)

    b128 = _round_up(batch, 128)
    tile_cap = max(128, (min(vmem_rows, hbm_rows) // 128) * 128)
    if rows_cap is not None:
        tile_cap = min(tile_cap, max(128, (rows_cap // 128) * 128))
    num_tiles = -(-b128 // tile_cap)                  # cdiv
    tile_b = _round_up(-(-b128 // num_tiles), 128)
    b_pad = tile_b * num_tiles
    return tile_b, b_pad, vmem_limit


@functools.partial(jax.jit, static_argnames=("rows_cap",))
def mlp_l_forward(x, weight, bias, *, rows_cap=None):
    """x: (B, n_mlp); weight: (5, n_mlp) (nn.Linear layout); bias: (5,).

    Returns softmax(leaky_relu(x @ weight.T + bias), dim=1) with shape (B, 5).
    """
    batch, n_mlp = x.shape
    out_dim = weight.shape[0]

    # Consume x in its native dtype; align the tiny weight to it. Bias stays
    # f32 for the f32 post-matmul path.
    w = weight.astype(x.dtype)
    b = bias.reshape(out_dim, 1).astype(jnp.float32)

    tile_b, b_pad, vmem_limit = _pick_tiling(
        batch, n_mlp, out_dim, x.dtype.itemsize, rows_cap)
    if b_pad != batch:
        x = jnp.pad(x, ((0, b_pad - batch), (0, 0)))
    grid = (b_pad // tile_b,)

    cost = pl.CostEstimate(
        flops=2 * b_pad * n_mlp * out_dim + 8 * b_pad * out_dim,
        transcendentals=b_pad * out_dim,
        bytes_accessed=(b_pad * n_mlp * x.dtype.itemsize
                        + out_dim * n_mlp * x.dtype.itemsize
                        + out_dim * 4
                        + b_pad * out_dim * x.dtype.itemsize),
    )

    out_t = pl.pallas_call(
        _mlp_l_kernel,
        out_shape=jax.ShapeDtypeStruct((out_dim, b_pad), x.dtype),
        grid=grid,
        in_specs=[
            pl.BlockSpec((tile_b, n_mlp), lambda i: (i, 0)),
            pl.BlockSpec((out_dim, n_mlp), lambda i: (0, 0)),
            pl.BlockSpec((out_dim, 1), lambda i: (0, 0)),
        ],
        out_specs=pl.BlockSpec((out_dim, tile_b), lambda i: (0, i)),
        compiler_params=pltpu.CompilerParams(
            dimension_semantics=("parallel",),
            vmem_limit_bytes=vmem_limit,
        ),
        cost_estimate=cost,
    )(x, w, b)

    # Tiny (5, b_pad) -> (B, 5) transpose + unpad in the wrapper.
    return out_t.T[:batch]


def reference_forward(x, weight, bias):
    logits = jnp.dot(x, weight.T, precision=lax.Precision.HIGHEST) + bias
    act = jnp.where(logits > 0, logits, 0.01 * logits)
    return jax.nn.softmax(act, axis=1)


if __name__ == "__main__":
    key = jax.random.PRNGKey(0)
    B, n_mlp, n_out = 8, 32, 5

    kx, kw, kb = jax.random.split(key, 3)
    x = jax.random.normal(kx, (B, n_mlp), dtype=jnp.float32)
    # Synthetic parameters in PyTorch nn.Linear(n_mlp, 5) layout/scale:
    # weight (5, n_mlp), bias (5,), uniform(-1/sqrt(n_mlp), 1/sqrt(n_mlp)).
    bound = 1.0 / float(jnp.sqrt(jnp.float32(n_mlp)))
    weight = jax.random.uniform(kw, (n_out, n_mlp), dtype=jnp.float32,
                                minval=-bound, maxval=bound)
    bias = jax.random.uniform(kb, (n_out,), dtype=jnp.float32,
                              minval=-bound, maxval=bound)

    out = jax.block_until_ready(mlp_l_forward(x, weight, bias))
    ref = reference_forward(x, weight, bias)
    assert out.shape == (B, n_out)
    assert jnp.allclose(out, ref, atol=2e-5, rtol=2e-5), "mismatch vs reference"

    # Multi-tile + padded-batch path (rows_cap forces grid > 1 at small B).
    B2 = 2052
    x2 = jax.random.normal(jax.random.PRNGKey(1), (B2, n_mlp), dtype=jnp.float32)
    out2 = jax.block_until_ready(mlp_l_forward(x2, weight, bias, rows_cap=512))
    ref2 = reference_forward(x2, weight, bias)
    assert out2.shape == (B2, n_out)
    assert jnp.allclose(out2, ref2, atol=2e-5, rtol=2e-5), "mismatch (tiled path)"

    print("KERNEL_OK")
</pallas_src>

<mosaic_0001>
module attributes {stable_mosaic.version = 11 : i64} {
  func.func @_mlp_l_kernel(%arg0: i32, %arg1: memref<128x32xf32, #tpu.memory_space<vmem>>, %arg2: memref<5x32xf32, #tpu.memory_space<vmem>>, %arg3: memref<5x1xf32, #tpu.memory_space<vmem>>, %arg4: memref<5x128xf32, #tpu.memory_space<vmem>>) attributes {dimension_semantics = [#tpu.dimension_semantics<parallel>], iteration_bounds = array<i64: 1>, scalar_prefetch = 0 : i64, scratch_operands = 0 : i64, tpu.core_type = #tpu.core_type<tc>, window_params = [{transform_indices = @transform_0, window_bounds = array<i64: 128, 32>}, {pipeline_mode = #tpu.pipeline_mode<synchronous>, transform_indices = @transform_1, window_bounds = array<i64: 5, 32>}, {pipeline_mode = #tpu.pipeline_mode<synchronous>, transform_indices = @transform_2, window_bounds = array<i64: 5, 1>}, {transform_indices = @transform_3, window_bounds = array<i64: 5, 128>}]} {
    %c0 = arith.constant 0 : index
    %c0_0 = arith.constant 0 : index
    %0 = vector.load %arg1[%c0, %c0_0] : memref<128x32xf32, #tpu.memory_space<vmem>>, vector<128x32xf32>
    %c0_1 = arith.constant 0 : index
    %c0_2 = arith.constant 0 : index
    %1 = vector.load %arg2[%c0_1, %c0_2] : memref<5x32xf32, #tpu.memory_space<vmem>>, vector<5x32xf32>
    %c0_3 = arith.constant 0 : index
    %c0_4 = arith.constant 0 : index
    %2 = vector.load %arg3[%c0_3, %c0_4] : memref<5x1xf32, #tpu.memory_space<vmem>>, vector<5x1xf32>
    %cst = arith.constant dense<0.000000e+00> : vector<5x128xf32>
    %3 = tpu.matmul %1, %0, %cst {dimension_numbers = #tpu.dot_dimension_numbers<[1], [1], [0], [0], [0, 0, 1, 0], [], []>} : vector<5x32xf32>, vector<128x32xf32>, vector<5x128xf32> -> vector<5x128xf32>
    %4 = vector.broadcast %2 : vector<5x1xf32> to vector<5x128xf32>
    %5 = arith.addf %3, %4 : vector<5x128xf32>
    %cst_5 = arith.constant 0.00999999977 : f32
    %6 = vector.broadcast %cst_5 : f32 to vector<5x128xf32>
    %7 = arith.mulf %6, %5 : vector<5x128xf32>
    %8 = arith.maximumf %5, %7 : vector<5x128xf32>
    %cst_6 = arith.constant dense<0xFF800000> : vector<128xf32>
    %9 = vector.multi_reduction <maximumf>, %8, %cst_6 [0] : vector<5x128xf32> to vector<128xf32>
    %10 = vector.shape_cast %9 : vector<128xf32> to vector<1x128xf32>
    %11 = vector.broadcast %10 : vector<1x128xf32> to vector<5x128xf32>
    %12 = arith.subf %8, %11 : vector<5x128xf32>
    %13 = math.exp %12 : vector<5x128xf32>
    %cst_7 = arith.constant dense<0.000000e+00> : vector<128xf32>
    %14 = vector.multi_reduction <add>, %13, %cst_7 [0] : vector<5x128xf32> to vector<128xf32>
    %15 = vector.shape_cast %14 : vector<128xf32> to vector<1x128xf32>
    %16 = vector.broadcast %15 : vector<1x128xf32> to vector<5x128xf32>
    %17 = arith.divf %13, %16 : vector<5x128xf32>
    %c0_8 = arith.constant 0 : index
    %c0_9 = arith.constant 0 : index
    %18 = vector.load %arg4[%c0_8, %c0_9] : memref<5x128xf32, #tpu.memory_space<vmem>>, vector<5x128xf32>
    tpu.vector_store %arg4[%c0_8, %c0_9], %17 {strides = array<i32>} : memref<5x128xf32, #tpu.memory_space<vmem>>, vector<5x128xf32>,
    return
  }
  func.func @transform_0(%arg0: i32) -> (i32, i32) {
    %c0_i32 = arith.constant 0 : i32
    %c0_i32_0 = arith.constant 0 : i32
    return %arg0, %c0_i32 : i32, i32
  }
  func.func @transform_1(%arg0: i32) -> (i32, i32) {
    %c0_i32 = arith.constant 0 : i32
    %c0_i32_0 = arith.constant 0 : i32
    %c0_i32_1 = arith.constant 0 : i32
    return %c0_i32, %c0_i32_0 : i32, i32
  }
  func.func @transform_2(%arg0: i32) -> (i32, i32) {
    %c0_i32 = arith.constant 0 : i32
    %c0_i32_0 = arith.constant 0 : i32
    %c0_i32_1 = arith.constant 0 : i32
    return %c0_i32, %c0_i32_0 : i32, i32
  }
  func.func @transform_3(%arg0: i32) -> (i32, i32) {
    %c0_i32 = arith.constant 0 : i32
    %c0_i32_0 = arith.constant 0 : i32
    return %c0_i32, %arg0 : i32, i32
  }
}

</mosaic_0001>

<bundles_post_ra>
// kernel: mlp_l_forward.1
= control target key start
LH: loop header
LB: loop body
LE: loop exit
PB: predicated region body
PF: predicated region fallthrough
CT: control target
= control target key end

     0   :  { %vm37_vm0 = vcmask 261120   ;;  %v263_v0 = vmov 0.0   ;;  %vm264_vm1 = vmmov 0   ;;  %v265_v2 = vmov 0   ;;  %s360_s0 = inlined_call_operand.vmem [shape: f32[128,32], index: 0, kind: input, shape index: {}]   ;;  %s361_s2 = inlined_call_operand.vmem [shape: f32[5,1], index: 2, kind: input, shape index: {}]   ;;  %s362_s1 = inlined_call_operand.vmem [shape: f32[5,32], index: 1, kind: input, shape index: {}]   ;;  %s363_s3 = inlined_call_operand.vmem [shape: f32[5,128], index: 3, kind: output, shape index: {}]  }
   0x1   :  { %220 = vmatprep.subr.mxu0 %v263_v0  ;;  %v29_v1 = vld [vmem:[%s360_s0 + $0x78] sm:$0xff]  ;;  %252 = vmatprep.mubr.msk.f32.mxu0 %vm264_vm1, %v263_v0  ;;  %v28_v3 = vld [vmem:[%s360_s0 + $0x70] sm:$0xff]  ;;  %v31_v4 = vld [vmem:[%s361_s2] sm:$0x1f]  ;;  %vm161_vm2 = vcmask 1044480  }
   0x2   :  { %221 = vmatpush3.xpose.msk.msra.mxu0 %vm37_vm0, %v29_v1  ;;  %258 = vset.pattern.permute.xlu0 %v265_v2  ;;  %v27_v5 = vld [vmem:[%s360_s0 + $0x68] sm:$0xff]  ;;  %v26_v6 = vld [vmem:[%s360_s0 + $0x60] sm:$0xff]  ;;  %v25_v7 = vld [vmem:[%s360_s0 + $0x58] sm:$0xff] }
   0x3   :  { %222 = vmatprep.subr.mxu0 %v263_v0  ;;  %34 = vperm.xlu0 %258, %v31_v4   ;;  %v24_v8 = vld [vmem:[%s360_s0 + $0x50] sm:$0xff]  ;;  %v23_v9 = vld [vmem:[%s360_s0 + $0x48] sm:$0xff]  ;;  %v22_v10 = vld [vmem:[%s360_s0 + $0x40] sm:$0xff] }
   0x4   :  { %v21_v11 = vld [vmem:[%s360_s0 + $0x38] sm:$0xff]  ;;  %v20_v12 = vld [vmem:[%s360_s0 + $0x30] sm:$0xff]  ;;  %v19_v13 = vld [vmem:[%s360_s0 + $0x28] sm:$0xff] }
   0x5   :  { %v18_v14 = vld [vmem:[%s360_s0 + $0x20] sm:$0xff]  ;;  %v17_v15 = vld [vmem:[%s360_s0 + $0x18] sm:$0xff]  ;;  %v16_v16 = vld [vmem:[%s360_s0 + $0x10] sm:$0xff] }
   0x6   :  { %223 = vmatpush3.xpose.msk.msra.mxu0 %vm37_vm0, %v28_v3  ;;  %v15_v17 = vld [vmem:[%s360_s0 + $0x8] sm:$0xff]  ;;  %v14_v18 = vld [vmem:[%s360_s0] sm:$0xff] }
   0x7   :  { %224 = vmatprep.subr.mxu0 %v263_v0  ;;  %v30_v19 = vld [vmem:[%s362_s1] sm:$0x1f] }
   0xa   :  { %225 = vmatpush3.xpose.msk.msra.mxu0 %vm37_vm0, %v27_v5 }
   0xb   :  { %226 = vmatprep.subr.mxu0 %v263_v0 }
   0xe   :  { %227 = vmatpush3.xpose.msk.msra.mxu0 %vm37_vm0, %v26_v6 }
   0xf   :  { %228 = vmatprep.subr.mxu0 %v263_v0 }
  0x12   :  { %229 = vmatpush3.xpose.msk.msra.mxu0 %vm37_vm0, %v25_v7 }
  0x13   :  { %230 = vmatprep.subr.mxu0 %v263_v0 }
  0x16   :  { %231 = vmatpush3.xpose.msk.msra.mxu0 %vm37_vm0, %v24_v8 }
  0x17   :  { %232 = vmatprep.subr.mxu0 %v263_v0 }
  0x1a   :  { %233 = vmatpush3.xpose.msk.msra.mxu0 %vm37_vm0, %v23_v9 }
  0x1b   :  { %234 = vmatprep.subr.mxu0 %v263_v0 }
  0x1e   :  { %235 = vmatpush3.xpose.msk.msra.mxu0 %vm37_vm0, %v22_v10 }
  0x1f   :  { %236 = vmatprep.subr.mxu0 %v263_v0 }
  0x22   :  { %237 = vmatpush3.xpose.msk.msra.mxu0 %vm37_vm0, %v21_v11 }
  0x23   :  { %238 = vmatprep.subr.mxu0 %v263_v0 }
  0x26   :  { %239 = vmatpush3.xpose.msk.msra.mxu0 %vm37_vm0, %v20_v12 }
  0x27   :  { %240 = vmatprep.subr.mxu0 %v263_v0 }
  0x2a   :  { %241 = vmatpush3.xpose.msk.msra.mxu0 %vm37_vm0, %v19_v13 }
  0x2b   :  { %242 = vmatprep.subr.mxu0 %v263_v0 }
  0x2e   :  { %243 = vmatpush3.xpose.msk.msra.mxu0 %vm37_vm0, %v18_v14 }
  0x2f   :  { %244 = vmatprep.subr.mxu0 %v263_v0 }
  0x32   :  { %245 = vmatpush3.xpose.msk.msra.mxu0 %vm37_vm0, %v17_v15 }
  0x33   :  { %246 = vmatprep.subr.mxu0 %v263_v0 }
  0x36   :  { %247 = vmatpush3.xpose.msk.msra.mxu0 %vm37_vm0, %v16_v16 }
  0x37   :  { %248 = vmatprep.subr.mxu0 %v263_v0 }
  0x3a   :  { %249 = vmatpush3.xpose.msk.msra.mxu0 %vm37_vm0, %v15_v17 }
  0x3b   :  { %250 = vmatprep.subr.mxu0 %v263_v0 }
  0x3e   :  { %251 = vmatpush3.xpose.msk.msra.mxu0 %vm37_vm0, %v14_v18 }
  0x41   :  { %253 = vmatmul.mubr.msk.f32.vlgmr.msra.gmra.mxu0 %vm37_vm0, %v30_v19 }
  0x7e   :  { %v35_v20 = vpop.permute.xlu0 %34 }
 0x101   :  { %v155_v21 = vpop.f32.mrf.mxu0 }
 0x102   :  { %v156_v22 = vadd.f32 %v155_v21, %v35_v20 }
 0x103   :  { %v254_v23 = vpop.f32.mrf.mxu0 }
 0x104   :  { %v159_v24 = vmul.f32 0.01, %v156_v22 }
 0x106   :  { %v160_v25 = vmax.f32 %v156_v22, %v159_v24 }
 0x108   :  { %v162_v26 = vsel %vm161_vm2, %v160_v25, -inf }
 0x109   :  { %v163_v27 = vrot.slane %v162_v26, 4 }
 0x10b   :  { %v164_v28 = vmax.f32 %v162_v26, %v163_v27 }
 0x10d   :  { %v165_v29 = vrot.slane %v164_v28, 2 }
 0x10f   :  { %v166_v30 = vmax.f32 %v164_v28, %v165_v29 }
 0x111   :  { %v167_v31 = vrot.slane %v166_v30, 1 }
 0x113   :  { %v168_v32 = vmax.f32 %v166_v30, %v167_v31 }
 0x115   :  { %v169_v33 = vsub.f32 %v160_v25, %v168_v32 }
 0x117   :  { %v170_v34 = vmul.f32 1.442695, %v169_v33 }
 0x119   :  { %259 = vpow2.f32 %v170_v34 }
 0x126   :  { %v260_v35 = vpop.eup %259 }
 0x127   :  { %v172_v36 = vsel %vm161_vm2, %v260_v35, 0.0 }
 0x128   :  { %v173_v37 = vrot.slane %v172_v36, 4 }
 0x12a   :  { %v174_v38 = vadd.f32 %v173_v37, %v172_v36 }
 0x12c   :  { %v175_v39 = vrot.slane %v174_v38, 2 }
 0x12e   :  { %v176_v40 = vadd.f32 %v175_v39, %v174_v38 }
 0x130   :  { %v177_v41 = vrot.slane %v176_v40, 1 }
 0x132   :  { %v178_v42 = vadd.f32 %v177_v41, %v176_v40 }
 0x134   :  { %261 = vrcp.f32 %v178_v42 }
 0x141   :  { %v262_v43 = vpop.eup %261 }
 0x142   :  { %v180_v44 = vmul.f32 %v262_v43, %v260_v35 }
 0x144   :  { %181 = vst [vmem:[%s363_s3] sm:$0x1f] %v180_v44 }

</bundles_post_ra>
